<compile_context>
chip_gen: v5e
topology: v5e:2x2
jax: 0.10.0
libtpu: 0.0.40
codegen_flags: <defaults>
</compile_context>

<pallas_src>
import functools

import jax
import jax.numpy as jnp
import numpy as np
from jax import lax
from jax.experimental import pallas as pl
from jax.experimental.pallas import tpu as pltpu

N_NODES = 240      # graph nodes == sequence length
D_HID = 180
D_LAT = 85
D_LAT_PAD = 128    # latent padded to a full lane group
TILE_B_MAX = 512   # max batch rows per grid step (multiple of 256)


def _cdiv(a, b):
    return -(-a // b)


def _round_up(x, m):
    return ((x + m - 1) // m) * m


def _choose_tiles(B):
    """Pick (tile_b, padded_batch, ntiles) minimizing padding, >=2 tiles when big."""
    b = max(B, 1)
    bp_min = _round_up(b, 8)
    # v7x megacore: make sure the 'parallel' axis has >= 2 steps for non-trivial B.
    min_tiles = 2 if bp_min > 128 else 1
    ntiles = max(_cdiv(b, TILE_B_MAX), min_tiles)
    tile_b = _round_up(_cdiv(b, ntiles), 8)
    bp = ntiles * tile_b
    return tile_b, bp, ntiles


# -----------------------------------------------------------------------------
# Kernel
# -----------------------------------------------------------------------------
def _ae_kernel(x_ref,                         # (TB, 240)   f32 batch tile
               a1_ref,                        # (240, 240)  bf16  A_hat^T * w_gcn_enc
               w2_ref,                        # (240, 180)  bf16  BN affine folded in
               w3_ref,                        # (180, 128)  bf16  cols 85..127 zero
               w4_ref,                        # (128, 180)  bf16  rows 85..127 zero
               w5_ref,                        # (180, 240)  bf16
               a2_ref,                        # (240, 240)  bf16  A_hat^T * w_gcn_dec
               bias_ref,                      # (8, 256)    f32 packed biases
               lat_ref,                       # out: (TB, 128) f32
               out_ref):                      # out: (TB, 240) f32
    dot = functools.partial(jnp.dot,
                            preferred_element_type=jnp.float32,
                            precision=lax.Precision.DEFAULT)

    x = x_ref[...].astype(jnp.bfloat16)
    bias = bias_ref[...]
    b2 = bias[0:1, :D_HID]
    b3 = bias[1:2, :D_LAT_PAD]
    b4 = bias[2:3, :D_HID]
    b5 = bias[3:4, :N_NODES]

    # ---------------- Encoder ----------------
    # GCNConv(1,1): out[b,i] = (sum_j A_hat[i,j] x[b,j]) * w  ==  x @ (A_hat^T * w)
    # (GCN bias is zero-initialized and folded out.)
    h = jnp.tanh(dot(x, a1_ref[...])).astype(jnp.bfloat16)
    # Dropout (eval) = identity; BatchNorm1d affine folded into W2 / b2.
    h = jnp.tanh(dot(h, w2_ref[...]) + b2).astype(jnp.bfloat16)
    lat = dot(h, w3_ref[...]) + b3               # f32 (TB, 128)
    lat_ref[...] = lat

    # ---------------- Decoder ----------------
    h = jnp.tanh(dot(lat.astype(jnp.bfloat16), w4_ref[...]) + b4).astype(jnp.bfloat16)
    h = jnp.tanh(dot(h, w5_ref[...]) + b5).astype(jnp.bfloat16)
    out_ref[...] = dot(h, a2_ref[...])


# -----------------------------------------------------------------------------
# Wrapper
# -----------------------------------------------------------------------------
def gcn_autoencoder_forward(x, params):
    """x: (B, 1, 240) float32.  Returns dict like the PyTorch module."""
    B = x.shape[0]
    x2d = x.reshape(B, N_NODES).astype(jnp.float32)

    tile_b, bp, ntiles = _choose_tiles(B)
    if bp != B:
        x2d = jnp.pad(x2d, ((0, bp - B), (0, 0)))
    grid = (ntiles,)

    def resident(shape):
        # constant index_map -> weights stay resident in VMEM across all tiles
        return pl.BlockSpec(shape, lambda i: (0, 0))

    lat_p, out_p = pl.pallas_call(
        _ae_kernel,
        out_shape=(
            jax.ShapeDtypeStruct((bp, D_LAT_PAD), jnp.float32),
            jax.ShapeDtypeStruct((bp, N_NODES), jnp.float32),
        ),
        grid=grid,
        in_specs=[
            pl.BlockSpec((tile_b, N_NODES), lambda i: (i, 0)),   # x batch tile
            resident((N_NODES, N_NODES)),                        # A1 (bf16)
            resident((N_NODES, D_HID)),                          # W2 (bf16, BN folded)
            resident((D_HID, D_LAT_PAD)),                        # W3 padded (bf16)
            resident((D_LAT_PAD, D_HID)),                        # W4 padded (bf16)
            resident((D_HID, N_NODES)),                          # W5 (bf16)
            resident((N_NODES, N_NODES)),                        # A2 (bf16)
            resident((8, 256)),                                  # bias slab (f32)
        ],
        out_specs=(
            pl.BlockSpec((tile_b, D_LAT_PAD), lambda i: (i, 0)),
            pl.BlockSpec((tile_b, N_NODES), lambda i: (i, 0)),
        ),
        compiler_params=pltpu.CompilerParams(
            dimension_semantics=("parallel",),
            vmem_limit_bytes=32 * 1024 * 1024,
        ),
    )(x2d, params["A1"], params["W2"], params["W3"], params["W4"],
      params["W5"], params["A2"], params["BIAS"])

    # The 85-lane latent slice is required by the module contract; the batch
    # slice is only materialized when padding rows were actually added.
    if bp != B:
        lat = lat_p[:B, :D_LAT]
        out = out_p[:B]
    else:
        lat = lat_p[:, :D_LAT]
        out = out_p
    return {
        "x_input": x,
        "x_latent": lat.reshape(B, 1, D_LAT),
        "x_output": out.reshape(B, 1, N_NODES),
    }


# -----------------------------------------------------------------------------
# Parameter construction (deterministic, synthetic)
# -----------------------------------------------------------------------------
def _linear_init(key, fan_in, fan_out):
    kw, kb = jax.random.split(key)
    bound = 1.0 / np.sqrt(fan_in)
    # stored already transposed: (in, out), so that y = x @ W + b
    W = jax.random.uniform(kw, (fan_in, fan_out), jnp.float32, -bound, bound)
    b = jax.random.uniform(kb, (fan_out,), jnp.float32, -bound, bound)
    return np.asarray(W), np.asarray(b)


def build_params(key, edge_index):
    # dense normalized adjacency A_hat = D^-1/2 (A + I) D^-1/2
    src, dst = edge_index
    A = np.zeros((N_NODES, N_NODES), dtype=np.float32)
    A[dst, src] = 1.0                                 # message from src -> dst
    A = A + np.eye(N_NODES, dtype=np.float32)         # self loops
    deg = A.sum(axis=1)
    dinv = 1.0 / np.sqrt(deg)
    A_hat_T = ((dinv[:, None] * A) * dinv[None, :]).T.astype(np.float32)

    keys = jax.random.split(key, 6)
    w_gcn_enc = float(jax.random.uniform(keys[0], (), jnp.float32, -1.0, 1.0))
    W2, b2 = _linear_init(keys[1], N_NODES, D_HID)
    W3, b3 = _linear_init(keys[2], D_HID, D_LAT)
    W4, b4 = _linear_init(keys[3], D_LAT, D_HID)
    W5, b5 = _linear_init(keys[4], D_HID, N_NODES)
    w_gcn_dec = float(jax.random.uniform(keys[5], (), jnp.float32, -1.0, 1.0))
    # GCNConv biases default-initialize to zero -> dropped from the kernel.

    # BatchNorm1d(1) eval: gamma=1, beta=0, running_mean=0, running_var=1
    eps = 1e-5
    gamma, beta, rmean, rvar = 1.0, 0.0, 0.0, 1.0
    bn_scale = np.float32(gamma / np.sqrt(rvar + eps))
    bn_shift = np.float32(beta - rmean * bn_scale)

    # Fold the BN affine into the following Linear: (h*s + t) @ W2 + b2
    W2f = (bn_scale * W2).astype(np.float32)
    b2f = (b2 + bn_shift * W2.sum(axis=0)).astype(np.float32)

    # Pad the latent lane dim 85 -> 128 (zero columns of W3 / zero rows of W4).
    W3p = np.zeros((D_HID, D_LAT_PAD), np.float32)
    W3p[:, :D_LAT] = W3
    W4p = np.zeros((D_LAT_PAD, D_HID), np.float32)
    W4p[:D_LAT, :] = W4

    # Pack all bias vectors into a single (8, 256) f32 VMEM slab.
    bias = np.zeros((8, 256), np.float32)
    bias[0, :D_HID] = b2f
    bias[1, :D_LAT] = b3          # padded lanes stay zero
    bias[2, :D_HID] = b4
    bias[3, :N_NODES] = b5

    bf16 = jnp.bfloat16
    params = {
        "A1": jnp.asarray(A_hat_T * w_gcn_enc, dtype=bf16),
        "W2": jnp.asarray(W2f, dtype=bf16),
        "W3": jnp.asarray(W3p, dtype=bf16),
        "W4": jnp.asarray(W4p, dtype=bf16),
        "W5": jnp.asarray(W5, dtype=bf16),
        "A2": jnp.asarray(A_hat_T * w_gcn_dec, dtype=bf16),
        "BIAS": jnp.asarray(bias),
    }
    raw = {   # unfolded / unpadded f32 parameters for the pure-JAX reference
        "A_hat_T": jnp.asarray(A_hat_T),
        "w_gcn_enc": w_gcn_enc, "w_gcn_dec": w_gcn_dec,
        "bn_scale": float(bn_scale), "bn_shift": float(bn_shift),
        "W2": jnp.asarray(W2), "b2": jnp.asarray(b2),
        "W3": jnp.asarray(W3), "b3": jnp.asarray(b3),
        "W4": jnp.asarray(W4), "b4": jnp.asarray(b4),
        "W5": jnp.asarray(W5), "b5": jnp.asarray(b5),
    }
    return params, raw


def reference_forward(x, raw):
    """Pure-JAX reference with the same bf16-operand / f32-accumulate matmuls."""
    B = x.shape[0]

    def bdot(a, w):
        return jnp.dot(a.astype(jnp.bfloat16),
                       jnp.asarray(w, jnp.float32).astype(jnp.bfloat16),
                       preferred_element_type=jnp.float32)

    h = x.reshape(B, N_NODES).astype(jnp.float32)
    h = jnp.tanh(bdot(h, raw["A_hat_T"] * raw["w_gcn_enc"]))
    h = h * raw["bn_scale"] + raw["bn_shift"]
    h = jnp.tanh(bdot(h, raw["W2"]) + raw["b2"])
    lat = bdot(h, raw["W3"]) + raw["b3"]
    h = jnp.tanh(bdot(lat, raw["W4"]) + raw["b4"])
    h = jnp.tanh(bdot(h, raw["W5"]) + raw["b5"])
    out = bdot(h, raw["A_hat_T"] * raw["w_gcn_dec"])
    return lat.reshape(B, 1, D_LAT), out.reshape(B, 1, N_NODES)


if __name__ == "__main__":
    key = jax.random.PRNGKey(0)
    k_x, k_p = jax.random.split(key)

    # deterministic ring graph over the 240 nodes (both directions)
    idx = np.arange(N_NODES)
    src = np.concatenate([idx, (idx + 1) % N_NODES])
    dst = np.concatenate([(idx + 1) % N_NODES, idx])
    edge_index = (src, dst)

    params, raw = build_params(k_p, edge_index)

    # B=2: tiny batch (one 8-row tile); B=200: two-tile grid with batch padding.
    for B in (2, 200):
        kb = jax.random.fold_in(k_x, B)
        x = jax.random.normal(kb, (B, 1, N_NODES), dtype=jnp.float32)

        result = gcn_autoencoder_forward(x, params)
        jax.block_until_ready(result)

        lat_ref, out_ref = reference_forward(x, raw)
        np.testing.assert_allclose(np.asarray(result["x_latent"]),
                                   np.asarray(lat_ref), rtol=2e-2, atol=2e-2)
        np.testing.assert_allclose(np.asarray(result["x_output"]),
                                   np.asarray(out_ref), rtol=2e-2, atol=2e-2)

        assert result["x_input"].shape == (B, 1, N_NODES)
        assert result["x_latent"].shape == (B, 1, D_LAT)
        assert result["x_output"].shape == (B, 1, N_NODES)

    print("KERNEL_OK")
</pallas_src>

<mosaic_0001>
module attributes {stable_mosaic.version = 11 : i64} {
  func.func @_ae_kernel(%arg0: i32, %arg1: memref<8x240xf32, #tpu.memory_space<vmem>>, %arg2: memref<240x240xbf16, #tpu.memory_space<vmem>>, %arg3: memref<240x180xbf16, #tpu.memory_space<vmem>>, %arg4: memref<180x128xbf16, #tpu.memory_space<vmem>>, %arg5: memref<128x180xbf16, #tpu.memory_space<vmem>>, %arg6: memref<180x240xbf16, #tpu.memory_space<vmem>>, %arg7: memref<240x240xbf16, #tpu.memory_space<vmem>>, %arg8: memref<8x256xf32, #tpu.memory_space<vmem>>, %arg9: memref<8x128xf32, #tpu.memory_space<vmem>>, %arg10: memref<8x240xf32, #tpu.memory_space<vmem>>) attributes {dimension_semantics = [#tpu.dimension_semantics<parallel>], iteration_bounds = array<i64: 1>, scalar_prefetch = 0 : i64, scratch_operands = 0 : i64, tpu.core_type = #tpu.core_type<tc>, window_params = [{transform_indices = @transform_0, window_bounds = array<i64: 8, 240>}, {pipeline_mode = #tpu.pipeline_mode<synchronous>, transform_indices = @transform_1, window_bounds = array<i64: 240, 240>}, {pipeline_mode = #tpu.pipeline_mode<synchronous>, transform_indices = @transform_2, window_bounds = array<i64: 240, 180>}, {pipeline_mode = #tpu.pipeline_mode<synchronous>, transform_indices = @transform_3, window_bounds = array<i64: 180, 128>}, {pipeline_mode = #tpu.pipeline_mode<synchronous>, transform_indices = @transform_4, window_bounds = array<i64: 128, 180>}, {pipeline_mode = #tpu.pipeline_mode<synchronous>, transform_indices = @transform_5, window_bounds = array<i64: 180, 240>}, {pipeline_mode = #tpu.pipeline_mode<synchronous>, transform_indices = @transform_6, window_bounds = array<i64: 240, 240>}, {pipeline_mode = #tpu.pipeline_mode<synchronous>, transform_indices = @transform_7, window_bounds = array<i64: 8, 256>}, {transform_indices = @transform_8, window_bounds = array<i64: 8, 128>}, {transform_indices = @transform_9, window_bounds = array<i64: 8, 240>}]} {
    %c0 = arith.constant 0 : index
    %c0_0 = arith.constant 0 : index
    %0 = vector.load %arg1[%c0, %c0_0] : memref<8x240xf32, #tpu.memory_space<vmem>>, vector<8x240xf32>
    %1 = arith.truncf %0 : vector<8x240xf32> to vector<8x240xbf16>
    %c0_1 = arith.constant 0 : index
    %c0_2 = arith.constant 0 : index
    %2 = vector.load %arg8[%c0_1, %c0_2] : memref<8x256xf32, #tpu.memory_space<vmem>>, vector<8x256xf32>
    %3 = vector.extract_strided_slice %2 {offsets = [0, 0], sizes = [1, 180], strides = [1, 1]} : vector<8x256xf32> to vector<1x180xf32>
    %4 = vector.extract_strided_slice %2 {offsets = [1, 0], sizes = [1, 128], strides = [1, 1]} : vector<8x256xf32> to vector<1x128xf32>
    %5 = vector.extract_strided_slice %2 {offsets = [2, 0], sizes = [1, 180], strides = [1, 1]} : vector<8x256xf32> to vector<1x180xf32>
    %6 = vector.extract_strided_slice %2 {offsets = [3, 0], sizes = [1, 240], strides = [1, 1]} : vector<8x256xf32> to vector<1x240xf32>
    %c0_3 = arith.constant 0 : index
    %c0_4 = arith.constant 0 : index
    %7 = vector.load %arg2[%c0_3, %c0_4] : memref<240x240xbf16, #tpu.memory_space<vmem>>, vector<240x240xbf16>
    %cst = arith.constant dense<0.000000e+00> : vector<8x240xf32>
    %8 = tpu.matmul %1, %7, %cst {dimension_numbers = #tpu.dot_dimension_numbers<[1], [0], [0], [1], [0, 0, 1, 1], [], []>} : vector<8x240xbf16>, vector<240x240xbf16>, vector<8x240xf32> -> vector<8x240xf32>
    %9 = math.tanh %8 : vector<8x240xf32>
    %10 = arith.truncf %9 : vector<8x240xf32> to vector<8x240xbf16>
    %c0_5 = arith.constant 0 : index
    %c0_6 = arith.constant 0 : index
    %11 = vector.load %arg3[%c0_5, %c0_6] : memref<240x180xbf16, #tpu.memory_space<vmem>>, vector<240x180xbf16>
    %cst_7 = arith.constant dense<0.000000e+00> : vector<8x180xf32>
    %12 = tpu.matmul %10, %11, %cst_7 {dimension_numbers = #tpu.dot_dimension_numbers<[1], [0], [0], [1], [0, 0, 1, 1], [], []>} : vector<8x240xbf16>, vector<240x180xbf16>, vector<8x180xf32> -> vector<8x180xf32>
    %13 = vector.broadcast %3 : vector<1x180xf32> to vector<8x180xf32>
    %14 = arith.addf %12, %13 : vector<8x180xf32>
    %15 = math.tanh %14 : vector<8x180xf32>
    %16 = arith.truncf %15 : vector<8x180xf32> to vector<8x180xbf16>
    %c0_8 = arith.constant 0 : index
    %c0_9 = arith.constant 0 : index
    %17 = vector.load %arg4[%c0_8, %c0_9] : memref<180x128xbf16, #tpu.memory_space<vmem>>, vector<180x128xbf16>
    %cst_10 = arith.constant dense<0.000000e+00> : vector<8x128xf32>
    %18 = tpu.matmul %16, %17, %cst_10 {dimension_numbers = #tpu.dot_dimension_numbers<[1], [0], [0], [1], [0, 0, 1, 1], [], []>} : vector<8x180xbf16>, vector<180x128xbf16>, vector<8x128xf32> -> vector<8x128xf32>
    %19 = vector.broadcast %4 : vector<1x128xf32> to vector<8x128xf32>
    %20 = arith.addf %18, %19 : vector<8x128xf32>
    %c0_11 = arith.constant 0 : index
    %c0_12 = arith.constant 0 : index
    %21 = vector.load %arg9[%c0_11, %c0_12] : memref<8x128xf32, #tpu.memory_space<vmem>>, vector<8x128xf32>
    tpu.vector_store %arg9[%c0_11, %c0_12], %20 {strides = array<i32>} : memref<8x128xf32, #tpu.memory_space<vmem>>, vector<8x128xf32>,
    %22 = arith.truncf %20 : vector<8x128xf32> to vector<8x128xbf16>
    %c0_13 = arith.constant 0 : index
    %c0_14 = arith.constant 0 : index
    %23 = vector.load %arg5[%c0_13, %c0_14] : memref<128x180xbf16, #tpu.memory_space<vmem>>, vector<128x180xbf16>
    %cst_15 = arith.constant dense<0.000000e+00> : vector<8x180xf32>
    %24 = tpu.matmul %22, %23, %cst_15 {dimension_numbers = #tpu.dot_dimension_numbers<[1], [0], [0], [1], [0, 0, 1, 1], [], []>} : vector<8x128xbf16>, vector<128x180xbf16>, vector<8x180xf32> -> vector<8x180xf32>
    %25 = vector.broadcast %5 : vector<1x180xf32> to vector<8x180xf32>
    %26 = arith.addf %24, %25 : vector<8x180xf32>
    %27 = math.tanh %26 : vector<8x180xf32>
    %28 = arith.truncf %27 : vector<8x180xf32> to vector<8x180xbf16>
    %c0_16 = arith.constant 0 : index
    %c0_17 = arith.constant 0 : index
    %29 = vector.load %arg6[%c0_16, %c0_17] : memref<180x240xbf16, #tpu.memory_space<vmem>>, vector<180x240xbf16>
    %cst_18 = arith.constant dense<0.000000e+00> : vector<8x240xf32>
    %30 = tpu.matmul %28, %29, %cst_18 {dimension_numbers = #tpu.dot_dimension_numbers<[1], [0], [0], [1], [0, 0, 1, 1], [], []>} : vector<8x180xbf16>, vector<180x240xbf16>, vector<8x240xf32> -> vector<8x240xf32>
    %31 = vector.broadcast %6 : vector<1x240xf32> to vector<8x240xf32>
    %32 = arith.addf %30, %31 : vector<8x240xf32>
    %33 = math.tanh %32 : vector<8x240xf32>
    %34 = arith.truncf %33 : vector<8x240xf32> to vector<8x240xbf16>
    %c0_19 = arith.constant 0 : index
    %c0_20 = arith.constant 0 : index
    %35 = vector.load %arg7[%c0_19, %c0_20] : memref<240x240xbf16, #tpu.memory_space<vmem>>, vector<240x240xbf16>
    %cst_21 = arith.constant dense<0.000000e+00> : vector<8x240xf32>
    %36 = tpu.matmul %34, %35, %cst_21 {dimension_numbers = #tpu.dot_dimension_numbers<[1], [0], [0], [1], [0, 0, 1, 1], [], []>} : vector<8x240xbf16>, vector<240x240xbf16>, vector<8x240xf32> -> vector<8x240xf32>
    %c0_22 = arith.constant 0 : index
    %c0_23 = arith.constant 0 : index
    %37 = vector.load %arg10[%c0_22, %c0_23] : memref<8x240xf32, #tpu.memory_space<vmem>>, vector<8x240xf32>
    tpu.vector_store %arg10[%c0_22, %c0_23], %36 {strides = array<i32>} : memref<8x240xf32, #tpu.memory_space<vmem>>, vector<8x240xf32>,
    return
  }
  func.func @transform_0(%arg0: i32) -> (i32, i32) {
    %c0_i32 = arith.constant 0 : i32
    %c0_i32_0 = arith.constant 0 : i32
    return %arg0, %c0_i32 : i32, i32
  }
  func.func @transform_1(%arg0: i32) -> (i32, i32) {
    %c0_i32 = arith.constant 0 : i32
    %c0_i32_0 = arith.constant 0 : i32
    %c0_i32_1 = arith.constant 0 : i32
    return %c0_i32, %c0_i32_0 : i32, i32
  }
  func.func @transform_2(%arg0: i32) -> (i32, i32) {
    %c0_i32 = arith.constant 0 : i32
    %c0_i32_0 = arith.constant 0 : i32
    %c0_i32_1 = arith.constant 0 : i32
    return %c0_i32, %c0_i32_0 : i32, i32
  }
  func.func @transform_3(%arg0: i32) -> (i32, i32) {
    %c0_i32 = arith.constant 0 : i32
    %c0_i32_0 = arith.constant 0 : i32
    %c0_i32_1 = arith.constant 0 : i32
    return %c0_i32, %c0_i32_0 : i32, i32
  }
  func.func @transform_4(%arg0: i32) -> (i32, i32) {
    %c0_i32 = arith.constant 0 : i32
    %c0_i32_0 = arith.constant 0 : i32
    %c0_i32_1 = arith.constant 0 : i32
    return %c0_i32, %c0_i32_0 : i32, i32
  }
  func.func @transform_5(%arg0: i32) -> (i32, i32) {
    %c0_i32 = arith.constant 0 : i32
    %c0_i32_0 = arith.constant 0 : i32
    %c0_i32_1 = arith.constant 0 : i32
    return %c0_i32, %c0_i32_0 : i32, i32
  }
  func.func @transform_6(%arg0: i32) -> (i32, i32) {
    %c0_i32 = arith.constant 0 : i32
    %c0_i32_0 = arith.constant 0 : i32
    %c0_i32_1 = arith.constant 0 : i32
    return %c0_i32, %c0_i32_0 : i32, i32
  }
  func.func @transform_7(%arg0: i32) -> (i32, i32) {
    %c0_i32 = arith.constant 0 : i32
    %c0_i32_0 = arith.constant 0 : i32
    %c0_i32_1 = arith.constant 0 : i32
    return %c0_i32, %c0_i32_0 : i32, i32
  }
  func.func @transform_8(%arg0: i32) -> (i32, i32) {
    %c0_i32 = arith.constant 0 : i32
    %c0_i32_0 = arith.constant 0 : i32
    return %arg0, %c0_i32 : i32, i32
  }
  func.func @transform_9(%arg0: i32) -> (i32, i32) {
    %c0_i32 = arith.constant 0 : i32
    %c0_i32_0 = arith.constant 0 : i32
    return %arg0, %c0_i32 : i32, i32
  }
}

</mosaic_0001>

<bundles_post_ra>
// kernel: tpu_custom_call.1
= control target key start
LH: loop header
LB: loop body
LE: loop exit
PB: predicated region body
PF: predicated region fallthrough
CT: control target
= control target key end

     0   :  { %15 = vsyncpa [#allocation3], 0  ;;  %s2815_s0 = inlined_call_operand.vmem [shape: f32[8,240], index: 0, kind: input, shape index: {}]   ;;  %s2816_s1 = inlined_call_operand.vmem [shape: bf16[240,240], index: 1, kind: input, shape index: {}]   ;;  %s2817_s2 = inlined_call_operand.vmem [shape: bf16[240,180], index: 2, kind: input, shape index: {}]   ;;  %s2818_s3 = inlined_call_operand.hbm [shape: bf16[180,128], index: 3, kind: input, shape index: {}]   ;;  %s2819_s4 = inlined_call_operand.vmem [shape: bf16[128,180], index: 4, kind: input, shape index: {}]   ;;  %s2820_s5 = inlined_call_operand.vmem [shape: bf16[180,240], index: 5, kind: input, shape index: {}]   ;;  %s2821_s6 = inlined_call_operand.hbm [shape: bf16[240,240], index: 6, kind: input, shape index: {}]   ;;  %s2822_s7 = inlined_call_operand.vmem [shape: f32[8,256], index: 7, kind: input, shape index: {}]   ;;  %s2823_s8 = inlined_call_operand.hbm [shape: f32[8,128], index: 8, kind: output, shape index: {0}]   ;;  %s2824_s9 = inlined_call_operand.hbm [shape: f32[8,240], index: 9, kind: output, shape index: {1}]  }
   0x1   :  { %16 = vsyncpa [#allocation6], 0 }
   0x2   :  { %17 = vsyncpa [#allocation4], 0 }
   0x3   :  { %18 = vsyncpa [#allocation9], 0  ;;  %s29_s11 = sshll.u32 %s2818_s3, 4  ;;  %s2118_s12 = smov [#allocation2]   ;;  %s30_s11 = int_to_ptr.hbm [resolvable:$true] %s29_s11 }
   0x4   :  { %s31_s13 = sshll.u32 %s2118_s12, 4  ;;  %s46_s16 = sshll.u32 %s2821_s6, 4  ;;  %s32_s13 = int_to_ptr.vmem [resolvable:$true] %s31_s13  ;;  %s47_s16 = int_to_ptr.hbm [resolvable:$true] %s46_s16 }
   0x5   :  { %s2119_s17 = smov 64   ;;  %s2120_s18 = smov 4  }
   0x6   :  { %37 = dma.hbm_to_vmem [thread:$0]  %s30_s11, 1472, %s32_s13, [#allocation3], %s2119_s17, %s2119_s17, %s2120_s18  }
   0x7   :  { %s2121_s19 = smov [#allocation5]   ;;  %s2122_s21 = smov 128  }
   0x8   :  { %s48_s20 = sshll.u32 %s2121_s19, 4  ;;  %s2123_s22 = smov 8   ;;  %s49_s20 = int_to_ptr.vmem [resolvable:$true] %s48_s20 }
   0x9   :  { %54 = dma.hbm_to_vmem [thread:$0]  %s47_s16, 3840, %s49_s20, [#allocation6], %s2122_s21, %s2122_s21, %s2123_s22  }
   0xa   :  { %2110 = dma.done.wait [#allocation3], 1472  }
   0xb   :  { %2111 = vsyncadd [#allocation3], 4294965824 }
   0xc   :  { %2112 = dma.done.wait [#allocation6], 3840  }
   0xd   :  { %2113 = vsyncadd [#allocation6], 4294963456  ;;  %v1865_v0 = vld [vmem:[%s2816_s1 + $0x74] sm:$0xf]  ;;  %v1346_v1 = vld [vmem:[%s2816_s1 + $0x78] sm:$0xf0] }
   0xe   :  { %v1879_v2 = vld [vmem:[%s2816_s1 + $0xe4] sm:$0xf]  ;;  %v1349_v3 = vor.u32 %v1865_v0, %v1346_v1  ;;  %v1402_v4 = vld [vmem:[%s2816_s1 + $0xe8] sm:$0xf0]  ;;  %v1344_v5 = vld [vmem:[%s2816_s1 + $0x70] sm:$0xf] }
   0xf   :  { %v1866_v6 = vld [vmem:[%s2816_s1 + $0x74] sm:$0xf0]  ;;  %v1405_v7 = vor.u32 %v1879_v2, %v1402_v4  ;;  %v1863_v9 = vld [vmem:[%s2816_s1 + $0x64] sm:$0xf]  ;;  %v1338_v10 = vld [vmem:[%s2816_s1 + $0x68] sm:$0xf0] }
  0x10   :  { %v1345_v8 = vor.u32 %v1866_v6, %v1344_v5  ;;  %v1877_v11 = vld [vmem:[%s2816_s1 + $0xd4] sm:$0xf]  ;;  %282 = vmatpush.bf16.msra.mxu2 %v1349_v3  ;;  %v1341_v12 = vor.u32 %v1863_v9, %v1338_v10  ;;  %v1394_v13 = vld [vmem:[%s2816_s1 + $0xd8] sm:$0xf0]  ;;  %v1336_v14 = vld [vmem:[%s2816_s1 + $0x60] sm:$0xf] }
  0x11   :  { %v1864_v15 = vld [vmem:[%s2816_s1 + $0x64] sm:$0xf0]  ;;  %296 = vmatpush.bf16.msra.mxu3 %v1405_v7  ;;  %v1397_v16 = vor.u32 %v1877_v11, %v1394_v13  ;;  %v1400_v18 = vld [vmem:[%s2816_s1 + $0xe0] sm:$0xf]  ;;  %v1861_v20 = vld [vmem:[%s2816_s1 + $0x54] sm:$0xf] }
  0x12   :  { %256 = vmatpush.bf16.msra.mxu0 %v1345_v8  ;;  %v1337_v17 = vor.u32 %v1864_v15, %v1336_v14  ;;  %v1880_v19 = vld [vmem:[%s2816_s1 + $0xe4] sm:$0xf0]  ;;  %v1330_v22 = vld [vmem:[%s2816_s1 + $0x58] sm:$0xf0]  ;;  %v1875_v23 = vld [vmem:[%s2816_s1 + $0xc4] sm:$0xf] }
  0x13   :  { %v1401_v21 = vor.u32 %v1880_v19, %v1400_v18  ;;  %v1386_v24 = vld [vmem:[%s2816_s1 + $0xc8] sm:$0xf0]  ;;  %v1328_v25 = vld [vmem:[%s2816_s1 + $0x50] sm:$0xf]  ;;  %v1862_v26 = vld [vmem:[%s2816_s1 + $0x54] sm:$0xf0]  ;;  %v1333_v28 = vor.u32 %v1861_v20, %v1330_v22 }
  0x14   :  { %v1392_v27 = vld [vmem:[%s2816_s1 + $0xd0] sm:$0xf]  ;;  %283 = vmatpush.bf16.msra.mxu2 %v1341_v12  ;;  %v1878_v29 = vld [vmem:[%s2816_s1 + $0xd4] sm:$0xf0]  ;;  %v1859_v30 = vld [vmem:[%s2816_s1 + $0x44] sm:$0xf]  ;;  %v1389_v32 = vor.u32 %v1875_v23, %v1386_v24  ;;  %v1329_v33 = vor.u32 %v1862_v26, %v1328_v25 }
  0x15   :  { %270 = vmatpush.bf16.msra.mxu1 %v1401_v21  ;;  %v1322_v31 = vld [vmem:[%s2816_s1 + $0x48] sm:$0xf0]  ;;  %297 = vmatpush.bf16.msra.mxu3 %v1397_v16  ;;  %v1393_v34 = vor.u32 %v1878_v29, %v1392_v27  ;;  %v1873_v35 = vld [vmem:[%s2816_s1 + $0xb4] sm:$0xf]  ;;  %v1378_v36 = vld [vmem:[%s2816_s1 + $0xb8] sm:$0xf0] }
  0x16   :  { %257 = vmatpush.bf16.msra.mxu0 %v1337_v17  ;;  %v1320_v37 = vld [vmem:[%s2816_s1 + $0x40] sm:$0xf]  ;;  %v1860_v38 = vld [vmem:[%s2816_s1 + $0x44] sm:$0xf0]  ;;  %v1325_v41 = vor.u32 %v1859_v30, %v1322_v31  ;;  %v1857_v43 = vld [vmem:[%s2816_s1 + $0x34] sm:$0xf]  ;;  %v1381_v45 = vor.u32 %v1873_v35, %v1378_v36 }
  0x17   :  { %v1384_v39 = vld [vmem:[%s2816_s1 + $0xc0] sm:$0xf]  ;;  %v1876_v40 = vld [vmem:[%s2816_s1 + $0xc4] sm:$0xf0]  ;;  %v1314_v44 = vld [vmem:[%s2816_s1 + $0x38] sm:$0xf0]  ;;  %v1321_v46 = vor.u32 %v1860_v38, %v1320_v37 }
  0x18   :  { %284 = vmatpush.bf16.msra.mxu2 %v1333_v28  ;;  %v1385_v42 = vor.u32 %v1876_v40, %v1384_v39  ;;  %v1871_v47 = vld [vmem:[%s2816_s1 + $0xa4] sm:$0xf]  ;;  %v1376_v48 = vld [vmem:[%s2816_s1 + $0xb0] sm:$0xf]  ;;  %v1874_v49 = vld [vmem:[%s2816_s1 + $0xb4] sm:$0xf0]  ;;  %v1317_v53 = vor.u32 %v1857_v43, %v1314_v44 }
  0x19   :  { %271 = vmatpush.bf16.msra.mxu1 %v1393_v34  ;;  %298 = vmatpush.bf16.msra.mxu3 %v1389_v32  ;;  %v1370_v50 = vld [vmem:[%s2816_s1 + $0xa8] sm:$0xf0]  ;;  %v1312_v51 = vld [vmem:[%s2816_s1 + $0x30] sm:$0xf]  ;;  %v1858_v52 = vld [vmem:[%s2816_s1 + $0x34] sm:$0xf0]  ;;  %v1377_v54 = vor.u32 %v1874_v49, %v1376_v48 }
  0x1a   :  { %258 = vmatpush.bf16.msra.mxu0 %v1329_v33  ;;  %v1855_v55 = vld [vmem:[%s2816_s1 + $0x24] sm:$0xf]  ;;  %v1306_v56 = vld [vmem:[%s2816_s1 + $0x28] sm:$0xf0]  ;;  %v1373_v57 = vor.u32 %v1871_v47, %v1370_v50  ;;  %v1313_v58 = vor.u32 %v1858_v52, %v1312_v51  ;;  %v1869_v59 = vld [vmem:[%s2816_s1 + $0x94] sm:$0xf] }
  0x1b   :  { %v1368_v60 = vld [vmem:[%s2816_s1 + $0xa0] sm:$0xf]  ;;  %v1872_v61 = vld [vmem:[%s2816_s1 + $0xa4] sm:$0xf0]  ;;  %v1362_v62 = vld [vmem:[%s2816_s1 + $0x98] sm:$0xf0]  ;;  %v1309_v1 = vor.u32 %v1855_v55, %v1306_v56 }
  0x1c   :  { %285 = vmatpush.bf16.msra.mxu2 %v1325_v41  ;;  %v1304_v63 = vld [vmem:[%s2816_s1 + $0x20] sm:$0xf]  ;;  %v1856_v0 = vld [vmem:[%s2816_s1 + $0x24] sm:$0xf0]  ;;  %v1369_v2 = vor.u32 %v1872_v61, %v1368_v60  ;;  %v1853_v3 = vld [vmem:[%s2816_s1 + $0x14] sm:$0xf]  ;;  %v1365_v5 = vor.u32 %v1869_v59, %v1362_v62 }
  0x1d   :  { %272 = vmatpush.bf16.msra.mxu1 %v1385_v42  ;;  %299 = vmatpush.bf16.msra.mxu3 %v1381_v45  ;;  %v1298_v4 = vld [vmem:[%s2816_s1 + $0x18] sm:$0xf0]  ;;  %v1305_v6 = vor.u32 %v1856_v0, %v1304_v63  ;;  %v1867_v7 = vld [vmem:[%s2816_s1 + $0x84] sm:$0xf]  ;;  %v1360_v8 = vld [vmem:[%s2816_s1 + $0x90] sm:$0xf] }
  0x1e   :  { %259 = vmatpush.bf16.msra.mxu0 %v1321_v46  ;;  %v1870_v9 = vld [vmem:[%s2816_s1 + $0x94] sm:$0xf0]  ;;  %v1354_v10 = vld [vmem:[%s2816_s1 + $0x88] sm:$0xf0]  ;;  %v1296_v11 = vld [vmem:[%s2816_s1 + $0x10] sm:$0xf]  ;;  %v1301_v14 = vor.u32 %v1853_v3, %v1298_v4 }
  0x1f   :  { %v1854_v12 = vld [vmem:[%s2816_s1 + $0x14] sm:$0xf0]  ;;  %v67_v13 = vld [vmem:[%s2815_s0 + $0x8] sm:$0xff]  ;;  %v1361_v15 = vor.u32 %v1870_v9, %v1360_v8  ;;  %v1851_v16 = vld [vmem:[%s2816_s1 + $0x4] sm:$0xf]  ;;  %v1357_v19 = vor.u32 %v1867_v7, %v1354_v10  ;;  %vm252_vm0 = vcmask 916480  }
  0x20   :  { %286 = vmatpush.bf16.msra.mxu2 %v1317_v53  ;;  %v1290_v17 = vld [vmem:[%s2816_s1 + $0x8] sm:$0xf0]  ;;  %v1288_v18 = vld [vmem:[%s2816_s1] sm:$0xf]  ;;  %v1297_v20 = vor.u32 %v1854_v12, %v1296_v11  ;;  %v1852_v21 = vld [vmem:[%s2816_s1 + $0x4] sm:$0xf0]  ;;  %v69_v31 = vpack.c.bf16 %v67_v13, %v67_v13 }
  0x21   :  { %273 = vmatpush.bf16.msra.mxu1 %v1377_v54  ;;  %300 = vmatpush.bf16.msra.mxu3 %v1373_v57  ;;  %v1522_v22 = vld [vmem:[%s2817_s2 + $0xe0] sm:$0xf]  ;;  %v1910_v23 = vld [vmem:[%s2817_s2 + $0xe4] sm:$0xf0]  ;;  %v1466_v26 = vld [vmem:[%s2817_s2 + $0x70] sm:$0xf]  ;;  %v1293_v32 = vor.u32 %v1851_v16, %v1290_v17  ;;  %v1289_v36 = vor.u32 %v1852_v21, %v1288_v18 }
  0x22   :  { %260 = vmatpush.bf16.msra.mxu0 %v1313_v58  ;;  %v1352_v24 = vld [vmem:[%s2816_s1 + $0x80] sm:$0xf]  ;;  %v1868_v25 = vld [vmem:[%s2816_s1 + $0x84] sm:$0xf0]  ;;  %v1523_v27 = vor.u32 %v1910_v23, %v1522_v22  ;;  %v1896_v28 = vld [vmem:[%s2817_s2 + $0x74] sm:$0xf0] }
  0x23   :  { %v1895_v29 = vld [vmem:[%s2817_s2 + $0x74] sm:$0xf]  ;;  %v1468_v30 = vld [vmem:[%s2817_s2 + $0x78] sm:$0xf0]  ;;  %v66_v33 = vld [vmem:[%s2815_s0] sm:$0xff]  ;;  %v1353_v37 = vor.u32 %v1868_v25, %v1352_v24  ;;  %v1467_v38 = vor.u32 %v1896_v28, %v1466_v26  ;;  %vm650_vm1 = vcmask 1041408  }
  0x24   :  { %287 = vmatpush.bf16.msra.mxu2 %v1309_v1  ;;  %v1514_v34 = vld [vmem:[%s2817_s2 + $0xd0] sm:$0xf]  ;;  %v1908_v35 = vld [vmem:[%s2817_s2 + $0xd4] sm:$0xf0]  ;;  %v1471_v39 = vor.u32 %v1895_v29, %v1468_v30  ;;  %v1458_v40 = vld [vmem:[%s2817_s2 + $0x60] sm:$0xf]  ;;  %v68_v43 = vpack.c.bf16 %v66_v33, %v66_v33 }
  0x25   :  { %274 = vmatpush.bf16.msra.mxu1 %v1369_v2  ;;  %301 = vmatpush.bf16.msra.mxu3 %v1365_v5  ;;  %v1909_v41 = vld [vmem:[%s2817_s2 + $0xe4] sm:$0xf]  ;;  %v1524_v42 = vld [vmem:[%s2817_s2 + $0xe8] sm:$0xf0]  ;;  %v1894_v44 = vld [vmem:[%s2817_s2 + $0x64] sm:$0xf0]  ;;  %v1515_v47 = vor.u32 %v1908_v35, %v1514_v34 }
  0x26   :  { %261 = vmatpush.bf16.msra.mxu0 %v1305_v6  ;;  %v1893_v45 = vld [vmem:[%s2817_s2 + $0x64] sm:$0xf]  ;;  %v1460_v46 = vld [vmem:[%s2817_s2 + $0x68] sm:$0xf0]  ;;  %v1506_v48 = vld [vmem:[%s2817_s2 + $0xc0] sm:$0xf]  ;;  %v1527_v50 = vor.u32 %v1909_v41, %v1524_v42  ;;  %v1459_v51 = vor.u32 %v1894_v44, %v1458_v40 }
  0x27   :  { %v1906_v49 = vld [vmem:[%s2817_s2 + $0xc4] sm:$0xf0]  ;;  %v1463_v52 = vor.u32 %v1893_v45, %v1460_v46  ;;  %v1450_v53 = vld [vmem:[%s2817_s2 + $0x50] sm:$0xf]  ;;  %v1907_v54 = vld [vmem:[%s2817_s2 + $0xd4] sm:$0xf] }
  0x28   :  { %288 = vmatpush.bf16.msra.mxu2 %v1301_v14  ;;  %v1516_v55 = vld [vmem:[%s2817_s2 + $0xd8] sm:$0xf0]  ;;  %v1892_v56 = vld [vmem:[%s2817_s2 + $0x54] sm:$0xf0]  ;;  %v1891_v57 = vld [vmem:[%s2817_s2 + $0x54] sm:$0xf]  ;;  %v1507_v59 = vor.u32 %v1906_v49, %v1506_v48 }
  0x29   :  { %275 = vmatpush.bf16.msra.mxu1 %v1361_v15  ;;  %302 = vmatpush.bf16.msra.mxu3 %v1357_v19  ;;  %v1452_v58 = vld [vmem:[%s2817_s2 + $0x58] sm:$0xf0]  ;;  %v1519_v60 = vor.u32 %v1907_v54, %v1516_v55  ;;  %v1451_v61 = vor.u32 %v1892_v56, %v1450_v53  ;;  %v1442_v63 = vld [vmem:[%s2817_s2 + $0x40] sm:$0xf]  ;;  %v1905_v0 = vld [vmem:[%s2817_s2 + $0xc4] sm:$0xf] }
  0x2a   :  { %262 = vmatpush.bf16.msra.mxu0 %v1297_v20  ;;  %v1455_v62 = vor.u32 %v1891_v57, %v1452_v58  ;;  %v1508_v1 = vld [vmem:[%s2817_s2 + $0xc8] sm:$0xf0]  ;;  %v1890_v2 = vld [vmem:[%s2817_s2 + $0x44] sm:$0xf0]  ;;  %v1889_v3 = vld [vmem:[%s2817_s2 + $0x44] sm:$0xf] }
  0x2b   :  { %v1444_v4 = vld [vmem:[%s2817_s2 + $0x48] sm:$0xf0]  ;;  %v1511_v5 = vor.u32 %v1905_v0, %v1508_v1  ;;  %v1443_v6 = vor.u32 %v1890_v2, %v1442_v63  ;;  %v1434_v8 = vld [vmem:[%s2817_s2 + $0x30] sm:$0xf]  ;;  %v1888_v9 = vld [vmem:[%s2817_s2 + $0x34] sm:$0xf0] }
  0x2c   :  { %1407 = vmatmul.msk.bf16.vlgmr.msra.gmra.mxu3 %vm252_vm0, %v69_v31  ;;  %289 = vmatpush.bf16.msra.mxu2 %v1293_v32  ;;  %v1447_v7 = vor.u32 %v1889_v3, %v1444_v4  ;;  %v1887_v10 = vld [vmem:[%s2817_s2 + $0x34] sm:$0xf]  ;;  %v1436_v11 = vld [vmem:[%s2817_s2 + $0x38] sm:$0xf0]  ;;  %v1435_v12 = vor.u32 %v1888_v9, %v1434_v8  ;;  %v1426_v14 = vld [vmem:[%s2817_s2 + $0x20] sm:$0xf] }
  0x2d   :  { %511 = vmatpush.bf16.msrb.mxu3 %v1523_v27  ;;  %276 = vmatpush.bf16.msra.mxu1 %v1353_v37  ;;  %v1439_v13 = vor.u32 %v1887_v10, %v1436_v11  ;;  %v1886_v15 = vld [vmem:[%s2817_s2 + $0x24] sm:$0xf0]  ;;  %v1498_v16 = vld [vmem:[%s2817_s2 + $0xb0] sm:$0xf]  ;;  %v1904_v18 = vld [vmem:[%s2817_s2 + $0xb4] sm:$0xf0] }
  0x2e   :  { %263 = vmatpush.bf16.msra.mxu0 %v1289_v36  ;;  %v1427_v17 = vor.u32 %v1886_v15, %v1426_v14  ;;  %v1885_v19 = vld [vmem:[%s2817_s2 + $0x24] sm:$0xf]  ;;  %v1428_v20 = vld [vmem:[%s2817_s2 + $0x28] sm:$0xf0]  ;;  %v1499_v21 = vor.u32 %v1904_v18, %v1498_v16  ;;  %v1903_v23 = vld [vmem:[%s2817_s2 + $0xb4] sm:$0xf] }
  0x2f   :  { %290 = vmatmul.bf16.vlgmr.msra.gmra.mxu2 %v68_v43  ;;  %v1431_v22 = vor.u32 %v1885_v19, %v1428_v20  ;;  %v1500_v24 = vld [vmem:[%s2817_s2 + $0xb8] sm:$0xf0]  ;;  %v1418_v26 = vld [vmem:[%s2817_s2 + $0x10] sm:$0xf]  ;;  %v1884_v27 = vld [vmem:[%s2817_s2 + $0x14] sm:$0xf0] }
  0x30   :  { %1406 = vmatmul.msk.bf16.vlgmr.msra.gmra.mxu1 %vm252_vm0, %v69_v31  ;;  %537 = vmatpush.bf16.msrb.mxu2 %v1527_v50  ;;  %v1503_v25 = vor.u32 %v1903_v23, %v1500_v24  ;;  %v1490_v28 = vld [vmem:[%s2817_s2 + $0xa0] sm:$0xf]  ;;  %v1419_v29 = vor.u32 %v1884_v27, %v1418_v26  ;;  %v1902_v30 = vld [vmem:[%s2817_s2 + $0xa4] sm:$0xf0]  ;;  %v1883_v31 = vld [vmem:[%s2817_s2 + $0x14] sm:$0xf] }
  0x31   :  { %497 = vmatpush.bf16.msrb.mxu1 %v1467_v38  ;;  %512 = vmatpush.bf16.msrb.mxu3 %v1515_v47  ;;  %v1420_v32 = vld [vmem:[%s2817_s2 + $0x18] sm:$0xf0]  ;;  %v1491_v33 = vor.u32 %v1902_v30, %v1490_v28  ;;  %v1901_v35 = vld [vmem:[%s2817_s2 + $0xa4] sm:$0xf]  ;;  %v1492_v36 = vld [vmem:[%s2817_s2 + $0xa8] sm:$0xf0] }
  0x32   :  { %523 = vmatpush.bf16.msrb.mxu0 %v1471_v39  ;;  %v1423_v34 = vor.u32 %v1883_v31, %v1420_v32  ;;  %v1495_v37 = vor.u32 %v1901_v35, %v1492_v36  ;;  %v1410_v38 = vld [vmem:[%s2817_s2] sm:$0xf]  ;;  %v1882_v39 = vld [vmem:[%s2817_s2 + $0x4] sm:$0xf0]  ;;  %v1482_v40 = vld [vmem:[%s2817_s2 + $0x90] sm:$0xf] }
  0x33   :  { %264 = vmatmul.bf16.vlgmr.msra.gmra.mxu0 %v68_v43  ;;  %v1411_v41 = vor.u32 %v1882_v39, %v1410_v38  ;;  %v1900_v42 = vld [vmem:[%s2817_s2 + $0x94] sm:$0xf0]  ;;  %v1881_v43 = vld [vmem:[%s2817_s2 + $0x4] sm:$0xf]  ;;  %v1412_v44 = vld [vmem:[%s2817_s2 + $0x8] sm:$0xf0] }
  0x34   :  { %538 = vmatpush.bf16.msrb.mxu2 %v1519_v60  ;;  %v1483_v45 = vor.u32 %v1900_v42, %v1482_v40  ;;  %v1415_v46 = vor.u32 %v1881_v43, %v1412_v44  ;;  %v1899_v47 = vld [vmem:[%s2817_s2 + $0x94] sm:$0xf]  ;;  %v1484_v48 = vld [vmem:[%s2817_s2 + $0x98] sm:$0xf0]  ;;  %v1474_v50 = vld [vmem:[%s2817_s2 + $0x80] sm:$0xf] }
  0x35   :  { %498 = vmatpush.bf16.msrb.mxu1 %v1459_v51  ;;  %513 = vmatpush.bf16.msrb.mxu3 %v1507_v59  ;;  %v1487_v49 = vor.u32 %v1899_v47, %v1484_v48  ;;  %v1898_v51 = vld [vmem:[%s2817_s2 + $0x84] sm:$0xf0]  ;;  %v1476_v54 = vld [vmem:[%s2817_s2 + $0x88] sm:$0xf0]  ;;  %v1918_v56 = vld [vmem:[#allocation2 + $0x38] sm:$0xff]  ;;  %vm646_vm2 = vcmask 424960  }
  0x36   :  { %524 = vmatpush.bf16.msrb.mxu0 %v1463_v52  ;;  %v1897_v52 = vld [vmem:[%s2817_s2 + $0x84] sm:$0xf]  ;;  %v1475_v53 = vor.u32 %v1898_v51, %v1474_v50  ;;  %v1917_v57 = vld [vmem:[#allocation2 + $0x30] sm:$0xff]  ;;  %v1916_v58 = vld [vmem:[#allocation2 + $0x28] sm:$0xff]  ;;  %s1259_s23 = sshll.u32 %s2823_s8, 4  ;;  %s2125_s24 = smov [#allocation8]   ;;  %s1260_s23 = int_to_ptr.hbm [resolvable:$true] %s1259_s23 }
  0x37   :  { %v1479_v55 = vor.u32 %v1897_v52, %v1476_v54  ;;  %v1915_v9 = vld [vmem:[#allocation2 + $0x20] sm:$0xff]  ;;  %v575_v10 = vld [vmem:[#allocation2 + $0x58] sm:$0x3]  ;;  %v1913_v15 = vld [vmem:[#allocation2 + $0x10] sm:$0xff]  ;;  %s1268_s0 = sshll.u32 %s2125_s24, 4  ;;  %s1270_s25 = sshll.u32 %s2824_s9, 4  ;;  %s1269_s0 = int_to_ptr.vmem [resolvable:$true] %s1268_s0  ;;  %s1271_s25 = int_to_ptr.hbm [resolvable:$true] %s1270_s25 }
  0x38   :  { %539 = vmatpush.bf16.msrb.mxu2 %v1511_v5  ;;  %v1914_v11 = vld [vmem:[#allocation2 + $0x18] sm:$0xff]  ;;  %v1921_v16 = vld [vmem:[#allocation2 + $0x50] sm:$0xff]  ;;  %v1920_v18 = vld [vmem:[#allocation2 + $0x48] sm:$0xff] }
  0x39   :  { %499 = vmatpush.bf16.msrb.mxu1 %v1451_v61  ;;  %514 = vmatpush.bf16.msrb.mxu3 %v1499_v21  ;;  %v1911_v19 = vld [vmem:[#allocation2] sm:$0xff]  ;;  %v1633_v21 = vld [vmem:[%s2819_s4 + $0x70] sm:$0xf]  ;;  %v1936_v23 = vld [vmem:[%s2819_s4 + $0x74] sm:$0xf] }
  0x3a   :  { %525 = vmatpush.bf16.msrb.mxu0 %v1455_v62  ;;  %v1919_v20 = vld [vmem:[#allocation2 + $0x40] sm:$0xff]  ;;  %v1935_v27 = vld [vmem:[%s2819_s4 + $0x64] sm:$0xf0]  ;;  %v1627_v30 = vld [vmem:[%s2819_s4 + $0x68] sm:$0xf0] }
  0x3b   :  { %v1625_v26 = vld [vmem:[%s2819_s4 + $0x60] sm:$0xf]  ;;  %v1932_v35 = vld [vmem:[%s2819_s4 + $0x54] sm:$0xf]  ;;  %v1619_v36 = vld [vmem:[%s2819_s4 + $0x58] sm:$0xf0] }
  0x3c   :  { %540 = vmatpush.bf16.msrb.mxu2 %v1503_v25  ;;  %v1635_v25 = vld [vmem:[%s2819_s4 + $0x78] sm:$0xf0]  ;;  %v1626_v31 = vor.u32 %v1935_v27, %v1625_v26  ;;  %v2592_v38 = vld [vmem:[%s2822_s7] sm:$0xff]  ;;  %v1931_v43 = vld [vmem:[%s2819_s4 + $0x44] sm:$0xf0] }
  0x3d   :  { %500 = vmatpush.bf16.msrb.mxu1 %v1443_v6  ;;  %515 = vmatpush.bf16.msrb.mxu3 %v1491_v33  ;;  %v1638_v28 = vor.u32 %v1936_v23, %v1635_v25  ;;  %v1617_v33 = vld [vmem:[%s2819_s4 + $0x50] sm:$0xf]  ;;  %v1609_v42 = vld [vmem:[%s2819_s4 + $0x40] sm:$0xf]  ;;  %v2603_v44 = vld [vmem:[%s2822_s7 + $0x8] sm:$0xff]  ;;  %v342_v48 = vperm.slane %v2592_v38, 0 }
  0x3e   :  { %526 = vmatpush.bf16.msrb.mxu0 %v1447_v7  ;;  %v1610_v47 = vor.u32 %v1931_v43, %v1609_v42  ;;  %v1601_v51 = vld [vmem:[%s2819_s4 + $0x30] sm:$0xf]  ;;  %v1929_v52 = vld [vmem:[%s2819_s4 + $0x34] sm:$0xf0]  ;;  %v1603_v54 = vld [vmem:[%s2819_s4 + $0x38] sm:$0xf0] }
  0x3f   :  { %v1579_v23 = vld [vmem:[%s2819_s4 + $0x8] sm:$0xf0]  ;;  %v1697_v25 = vld [vmem:[%s2820_s5 + $0x70] sm:$0xf]  ;;  %v1953_v26 = vld [vmem:[%s2820_s5 + $0x74] sm:$0xf0] }
  0x40   :  { %541 = vmatpush.bf16.msrb.mxu2 %v1495_v37  ;;  %v1952_v27 = vld [vmem:[%s2820_s5 + $0x74] sm:$0xf]  ;;  %v1683_v42 = vld [vmem:[%s2820_s5 + $0x58] sm:$0xf0] }
  0x41   :  { %501 = vmatpush.bf16.msrb.mxu1 %v1435_v12  ;;  %516 = vmatpush.bf16.msrb.mxu3 %v1483_v45  ;;  %v622_v12 = vunpack.c.l.b16 %v575_v10  ;;  %v1930_v45 = vld [vmem:[%s2819_s4 + $0x44] sm:$0xf] }
  0x42   :  { %527 = vmatpush.bf16.msrb.mxu0 %v1439_v13 }
  0x43   :  { %v634_v13 = vpack.c.b16 %v622_v12, %v622_v12 }
  0x44   :  { %542 = vmatpush.bf16.msrb.mxu2 %v1487_v49  ;;  %v343_v49 = vperm.slane %v2603_v44, 0 }
  0x45   :  { %502 = vmatpush.bf16.msrb.mxu1 %v1427_v17  ;;  %517 = vmatpush.bf16.msrb.mxu3 %v1475_v53  ;;  %v652_v14 = vsel %vm650_vm1, %v634_v13, 0  ;;  %v1912_v17 = vld [vmem:[#allocation2 + $0x8] sm:$0xff]  ;;  %v1928_v53 = vld [vmem:[%s2819_s4 + $0x34] sm:$0xf]  ;;  %v1585_v13 = vld [vmem:[%s2819_s4 + $0x10] sm:$0xf] }
  0x46   :  { %528 = vmatpush.bf16.msrb.mxu0 %v1431_v22  ;;  %v1937_v22 = vld [vmem:[%s2819_s4 + $0x74] sm:$0xf0] }
  0x47   :  { %v1634_v24 = vor.u32 %v1937_v22, %v1633_v21  ;;  %v1922_v21 = vld [vmem:[%s2819_s4 + $0x4] sm:$0xf] }
  0x48   :  { %543 = vmatpush.bf16.msrb.mxu2 %v1479_v55  ;;  %v1602_v55 = vor.u32 %v1929_v52, %v1601_v51  ;;  %v1947_v51 = vld [vmem:[%s2820_s5 + $0x44] sm:$0xf0] }
  0x49   :  { %503 = vmatpush.bf16.msrb.mxu1 %v1419_v29  ;;  %654 = vmatpush.bf16.msra.mxu3 %v1918_v56  ;;  %v1934_v29 = vld [vmem:[%s2819_s4 + $0x64] sm:$0xf] }
  0x4a   :  { %529 = vmatpush.bf16.msrb.mxu0 %v1423_v34  ;;  %v1630_v32 = vor.u32 %v1934_v29, %v1627_v30  ;;  %v1933_v34 = vld [vmem:[%s2819_s4 + $0x54] sm:$0xf0]  ;;  %v1699_v29 = vld [vmem:[%s2820_s5 + $0x78] sm:$0xf0]  ;;  %v1689_v30 = vld [vmem:[%s2820_s5 + $0x60] sm:$0xf] }
  0x4b   :  { %v1618_v37 = vor.u32 %v1933_v34, %v1617_v33  ;;  %v1950_v33 = vld [vmem:[%s2820_s5 + $0x64] sm:$0xf]  ;;  %v1691_v34 = vld [vmem:[%s2820_s5 + $0x68] sm:$0xf0] }
  0x4c   :  { %780 = vmatpush.bf16.msra.mxu2 %v1634_v24  ;;  %v1582_v24 = vor.u32 %v1922_v21, %v1579_v23  ;;  %v1943_v21 = vld [vmem:[%s2820_s5 + $0x24] sm:$0xf0] }
  0x4d   :  { %504 = vmatpush.bf16.msrb.mxu1 %v1411_v41  ;;  %655 = vmatpush.bf16.msra.mxu3 %v1917_v57  ;;  %v1622_v41 = vor.u32 %v1932_v35, %v1619_v36  ;;  %v1694_v36 = vor.u32 %v1950_v33, %v1691_v34  ;;  %v1941_v33 = vld [vmem:[%s2820_s5 + $0x14] sm:$0xf0]  ;;  %v1940_v34 = vld [vmem:[%s2820_s5 + $0x14] sm:$0xf] }
  0x4e   :  { %530 = vmatpush.bf16.msrb.mxu0 %v1415_v46  ;;  %v1611_v46 = vld [vmem:[%s2819_s4 + $0x48] sm:$0xf0] }
  0x4f   :  { %v1614_v50 = vor.u32 %v1930_v45, %v1611_v46 }
  0x50   :  { %781 = vmatpush.bf16.msra.mxu2 %v1626_v31  ;;  %v1951_v31 = vld [vmem:[%s2820_s5 + $0x64] sm:$0xf0] }
  0x51   :  { %656 = vmatpush.bf16.msra.mxu3 %v1916_v58  ;;  %671 = vmatpush.bf16.msra.mxu1 %v652_v14  ;;  %v1925_v14 = vld [vmem:[%s2819_s4 + $0x14] sm:$0xf0]  ;;  %v1690_v35 = vor.u32 %v1951_v31, %v1689_v30  ;;  %v1707_v30 = vld [vmem:[%s2820_s5 + $0x88] sm:$0xf0] }
  0x52   :  { %793 = vmatpush.bf16.msra.mxu0 %v1638_v28  ;;  %v1698_v28 = vor.u32 %v1953_v26, %v1697_v25  ;;  %v1705_v26 = vld [vmem:[%s2820_s5 + $0x80] sm:$0xf] }
  0x54   :  { %782 = vmatpush.bf16.msra.mxu2 %v1618_v37  ;;  %v1681_v37 = vld [vmem:[%s2820_s5 + $0x50] sm:$0xf] }
  0x55   :  { %657 = vmatpush.bf16.msra.mxu3 %v1915_v9  ;;  %672 = vmatpush.bf16.msra.mxu1 %v1921_v16  ;;  %v1926_v9 = vld [vmem:[%s2819_s4 + $0x24] sm:$0xf]  ;;  %v1586_v16 = vor.u32 %v1925_v14, %v1585_v13  ;;  %v1713_v14 = vld [vmem:[%s2820_s5 + $0x90] sm:$0xf] }
  0x56   :  { %794 = vmatpush.bf16.msra.mxu0 %v1630_v32  ;;  %v1702_v32 = vor.u32 %v1952_v27, %v1699_v29  ;;  %v1955_v27 = vld [vmem:[%s2820_s5 + $0x84] sm:$0xf0] }
  0x57   :  { %v1706_v29 = vor.u32 %v1955_v27, %v1705_v26  ;;  %v1986_v27 = vld [vmem:[#allocation5 + $0xd4] sm:$0xf] }
  0x58   :  { %783 = vmatpush.bf16.msra.mxu2 %v1610_v47 }
  0x59   :  { %658 = vmatpush.bf16.msra.mxu3 %v1914_v11  ;;  %673 = vmatpush.bf16.msra.mxu1 %v1920_v18  ;;  %v1595_v11 = vld [vmem:[%s2819_s4 + $0x28] sm:$0xf0] }
  0x5a   :  { %795 = vmatpush.bf16.msra.mxu0 %v1622_v41  ;;  %v1598_v12 = vor.u32 %v1926_v9, %v1595_v11  ;;  %v1948_v41 = vld [vmem:[%s2820_s5 + $0x54] sm:$0xf]  ;;  %v1945_v9 = vld [vmem:[%s2820_s5 + $0x34] sm:$0xf0] }
  0x5c   :  { %784 = vmatpush.bf16.msra.mxu2 %v1602_v55  ;;  %v1675_v55 = vld [vmem:[%s2820_s5 + $0x48] sm:$0xf0] }
  0x5d   :  { %659 = vmatpush.bf16.msra.mxu3 %v1913_v15  ;;  %674 = vmatpush.bf16.msra.mxu1 %v1919_v20  ;;  %v1924_v15 = vld [vmem:[%s2819_s4 + $0x14] sm:$0xf]  ;;  %v1923_v20 = vld [vmem:[%s2819_s4 + $0x4] sm:$0xf0] }
  0x5e   :  { %796 = vmatpush.bf16.msra.mxu0 %v1614_v50  ;;  %v1673_v50 = vld [vmem:[%s2820_s5 + $0x40] sm:$0xf] }
  0x61   :  { %660 = vmatpush.bf16.msra.mxu3 %v1912_v17  ;;  %v1587_v17 = vld [vmem:[%s2819_s4 + $0x18] sm:$0xf0] }
  0x62   :  { %v1590_v18 = vor.u32 %v1924_v15, %v1587_v17  ;;  %v1957_v15 = vld [vmem:[%s2820_s5 + $0x94] sm:$0xf0] }
  0x63   :  { %v1714_v17 = vor.u32 %v1957_v15, %v1713_v14 }
  0x65   :  { %661 = vmatpush.bf16.msra.mxu3 %v1911_v19  ;;  %v1577_v19 = vld [vmem:[%s2819_s4] sm:$0xf] }
  0x66   :  { %v1578_v22 = vor.u32 %v1923_v20, %v1577_v19  ;;  %v1657_v20 = vld [vmem:[%s2820_s5 + $0x20] sm:$0xf] }
  0x67   :  { %v1658_v23 = vor.u32 %v1943_v21, %v1657_v20  ;;  %v1968_v20 = vld [vmem:[#allocation5 + $0x44] sm:$0xf] }
  0xad   :  { %v278_v60 = vpop.f32.mrf.mxu1 }
  0xaf   :  { %v304_v62 = vpop.f32.mrf.mxu3 }
  0xb0   :  { %v265_v59 = vpop.f32.mrf.mxu0 }
  0xb1   :  { %v279_v61 = vadd.f32 %v278_v60, %v265_v59  ;;  %v1606_v60 = vor.u32 %v1928_v53, %v1603_v54  ;;  %v1946_v54 = vld [vmem:[%s2820_s5 + $0x44] sm:$0xf] }
  0xb2   :  { %v291_v63 = vpop.f32.mrf.mxu2 }
  0xb3   :  { %1998 = vtanh.f32 %v279_v61  ;;  %v305_v0 = vadd.f32 %v304_v62, %v291_v63  ;;  %797 = vmatpush.bf16.msra.mxu0 %v1606_v60 }
  0xb5   :  { %2000 = vtanh.f32 %v305_v0  ;;  %v280_v2 = vpop.f32.mrf.mxu1 }
  0xb7   :  { %v306_v5 = vpop.f32.mrf.mxu3  ;;  %798 = vmatpush.bf16.msra.mxu0 %v1598_v12  ;;  %v1667_v12 = vld [vmem:[%s2820_s5 + $0x38] sm:$0xf0] }
  0xb8   :  { %v267_v1 = vpop.f32.mrf.mxu0 }
  0xb9   :  { %v1999_v3 = vpop.eup %1998 }
  0xba   :  { %v310_v4 = vpack.c.bf16 %v1999_v3, %v1999_v3  ;;  %v293_v6 = vpop.f32.mrf.mxu2 }
  0xbb   :  { %v2001_v7 = vpop.eup %2000  ;;  %799 = vmatpush.bf16.msra.mxu0 %v1590_v18  ;;  %v1715_v18 = vld [vmem:[%s2820_s5 + $0x98] sm:$0xf0] }
  0xbc   :  { %505 = vmatmul.bf16.vlgmr.msrb.gmra.mxu1 %v310_v4  ;;  %531 = vmatmul.bf16.vlgmr.msrb.gmra.mxu0 %v310_v4  ;;  %v311_v8 = vpack.c.bf16 %v2001_v7, %v2001_v7  ;;  %v1593_v7 = vld [vmem:[%s2819_s4 + $0x20] sm:$0xf] }
  0xbd   :  { %959 = vmatpush.bf16.msrb.mxu1 %v1698_v28  ;;  %v1954_v28 = vld [vmem:[%s2820_s5 + $0x84] sm:$0xf] }
  0xbe   :  { %1528 = vmatmul.msk.bf16.vlgmr.msrb.gmra.mxu3 %vm252_vm0, %v311_v8  ;;  %1529 = vmatmul.msk.bf16.vlgmr.msrb.gmra.mxu2 %vm252_vm0, %v311_v8  ;;  %v1927_v8 = vld [vmem:[%s2819_s4 + $0x24] sm:$0xf0]  ;;  %v1710_v31 = vor.u32 %v1954_v28, %v1707_v30  ;;  %v1837_v28 = vld [vmem:[#allocation5 + $0xd8] sm:$0xf0] }
  0xbf   :  { %v1594_v10 = vor.u32 %v1927_v8, %v1593_v7  ;;  %800 = vmatpush.bf16.msra.mxu0 %v1582_v24  ;;  %v1665_v8 = vld [vmem:[%s2820_s5 + $0x30] sm:$0xf]  ;;  %v1659_v24 = vld [vmem:[%s2820_s5 + $0x28] sm:$0xf0]  ;;  %v1840_v30 = vor.u32 %v1986_v27, %v1837_v28 }
  0xc0   :  { %v1666_v11 = vor.u32 %v1945_v9, %v1665_v8  ;;  %v698_v9 = vperm.slane %v2592_v38, 2 }
  0xc1   :  { %785 = vmatpush.bf16.msra.mxu2 %v1594_v10  ;;  %960 = vmatpush.bf16.msrb.mxu1 %v1690_v35  ;;  %v1944_v10 = vld [vmem:[%s2820_s5 + $0x34] sm:$0xf] }
  0xc2   :  { %v1670_v13 = vor.u32 %v1944_v10, %v1667_v12 }
  0xc5   :  { %786 = vmatpush.bf16.msra.mxu2 %v1586_v16  ;;  %v1956_v16 = vld [vmem:[%s2820_s5 + $0x94] sm:$0xf] }
  0xc6   :  { %v1718_v19 = vor.u32 %v1956_v16, %v1715_v18  ;;  %v1763_v18 = vld [vmem:[#allocation5 + $0x40] sm:$0xf] }
  0xc9   :  { %787 = vmatpush.bf16.msra.mxu2 %v1578_v22  ;;  %v1942_v22 = vld [vmem:[%s2820_s5 + $0x24] sm:$0xf] }
  0xca   :  { %v1662_v25 = vor.u32 %v1942_v22, %v1659_v24  ;;  %v1765_v22 = vld [vmem:[#allocation5 + $0x48] sm:$0xf0]  ;;  %v1987_v24 = vld [vmem:[#allocation5 + $0xd4] sm:$0xf0] }
  0xcd   :  { %985 = vmatpush.bf16.msrb.mxu2 %v1702_v32  ;;  %v1649_v32 = vld [vmem:[%s2820_s5 + $0x10] sm:$0xf] }
  0xce   :  { %v1650_v35 = vor.u32 %v1941_v33, %v1649_v32  ;;  %v1966_v32 = vld [vmem:[#allocation5 + $0x34] sm:$0xf]  ;;  %v1757_v33 = vld [vmem:[#allocation5 + $0x38] sm:$0xf0] }
  0xd1   :  { %986 = vmatpush.bf16.msrb.mxu2 %v1694_v36  ;;  %v1651_v36 = vld [vmem:[%s2820_s5 + $0x18] sm:$0xf0] }
 0x139   :  { %v506_v39 = vpop.f32.mrf.mxu1  ;;  %v532_v40 = vpop.f32.mrf.mxu0 }
 0x13a   :  { %v507_v56 = vadd.f32 %v506_v39, %v342_v48  ;;  %v533_v57 = vadd.f32 %v532_v40, %v343_v49  ;;  %v1949_v39 = vld [vmem:[%s2820_s5 + $0x54] sm:$0xf0]  ;;  %v832_v40 = vld [vmem:[%s2820_s5 + $0xb0] sm:$0x33]  ;;  %v1686_v49 = vor.u32 %v1948_v41, %v1683_v42  ;;  %v1938_v41 = vld [vmem:[%s2820_s5 + $0x4] sm:$0xf] }
 0x13b   :  { %v902_v43 = vunpack.c.l.b16 %v832_v40  ;;  %v903_v45 = vunpack.c.h.b16 %v832_v40  ;;  %v1682_v46 = vor.u32 %v1949_v39, %v1681_v37  ;;  %v1654_v37 = vor.u32 %v1940_v34, %v1651_v36  ;;  %v1641_v39 = vld [vmem:[%s2820_s5] sm:$0xf]  ;;  %v1939_v40 = vld [vmem:[%s2820_s5 + $0x4] sm:$0xf0]  ;;  %v1827_v36 = vld [vmem:[#allocation5 + $0xc0] sm:$0xf] }
 0x13c   :  { %987 = vmatpush.bf16.msrb.mxu2 %v1686_v49  ;;  %v1642_v42 = vor.u32 %v1939_v40, %v1641_v39  ;;  %v1984_v39 = vld [vmem:[#allocation5 + $0xc4] sm:$0xf] }
 0x13d   :  { %v926_v47 = vpack.c.b16 %v902_v43, %v902_v43  ;;  %v927_v48 = vpack.c.b16 %v903_v45, %v903_v45  ;;  %961 = vmatpush.bf16.msrb.mxu1 %v1682_v46  ;;  %v1643_v43 = vld [vmem:[%s2820_s5 + $0x8] sm:$0xf0] }
 0x13e   :  { %v1646_v45 = vor.u32 %v1938_v41, %v1643_v43  ;;  %v1787_v46 = vld [vmem:[#allocation5 + $0x70] sm:$0xf]  ;;  %v1829_v41 = vld [vmem:[#allocation5 + $0xc8] sm:$0xf0]  ;;  %v1747_v43 = vld [vmem:[#allocation5 + $0x20] sm:$0xf] }
 0x13f   :  { %v954_v52 = vsel %vm650_vm1, %v926_v47, 0  ;;  %v957_v53 = vsel %vm650_vm1, %v927_v48, 0  ;;  %v1975_v47 = vld [vmem:[#allocation5 + $0x74] sm:$0xf0]  ;;  %v1974_v48 = vld [vmem:[#allocation5 + $0x74] sm:$0xf] }
 0x140   :  { %976 = vmatpush.bf16.msrb.mxu3 %v954_v52  ;;  %1002 = vmatpush.bf16.msrb.mxu0 %v957_v53  ;;  %v1788_v49 = vor.u32 %v1975_v47, %v1787_v46  ;;  %v1973_v52 = vld [vmem:[#allocation5 + $0x64] sm:$0xf0]  ;;  %v1964_v46 = vld [vmem:[#allocation5 + $0x24] sm:$0xf] }
 0x141   :  { %v508_v58 = vpop.f32.mrf.mxu1  ;;  %v534_v59 = vpop.f32.mrf.mxu0 }
 0x142   :  { %v519_v61 = vpop.f32.mrf.mxu3  ;;  %v545_v62 = vpop.f32.mrf.mxu2  ;;  %v576_v59 = vperm.slane %v2592_v38, 1 }
 0x143   :  { %v520_v63 = vadd.f32 %v519_v61, %v507_v56  ;;  %v546_v0 = vadd.f32 %v545_v62, %v533_v57  ;;  %v1674_v56 = vor.u32 %v1947_v51, %v1673_v50  ;;  %v1678_v57 = vor.u32 %v1946_v54, %v1675_v55  ;;  %v1789_v50 = vld [vmem:[#allocation5 + $0x78] sm:$0xf0]  ;;  %v1779_v51 = vld [vmem:[#allocation5 + $0x60] sm:$0xf]  ;;  %v1972_v54 = vld [vmem:[#allocation5 + $0x64] sm:$0xf] }
 0x144   :  { %v1792_v53 = vor.u32 %v1974_v48, %v1789_v50  ;;  %v1781_v55 = vld [vmem:[#allocation5 + $0x68] sm:$0xf0]  ;;  %v1819_v50 = vld [vmem:[#allocation5 + $0xb0] sm:$0xf] }
 0x145   :  { %2002 = vtanh.f32 %v520_v63  ;;  %962 = vmatpush.bf16.msrb.mxu1 %v1674_v56  ;;  %988 = vmatpush.bf16.msrb.mxu2 %v1678_v57  ;;  %v1780_v56 = vor.u32 %v1973_v52, %v1779_v51  ;;  %v1771_v57 = vld [vmem:[#allocation5 + $0x50] sm:$0xf]  ;;  %v1749_v48 = vld [vmem:[#allocation5 + $0x28] sm:$0xf0]  ;;  %v1983_v51 = vld [vmem:[#allocation5 + $0xb4] sm:$0xf0] }
 0x146   :  { %2004 = vtanh.f32 %v546_v0  ;;  %v1982_v52 = vld [vmem:[#allocation5 + $0xb4] sm:$0xf] }
 0x149   :  { %963 = vmatpush.bf16.msrb.mxu1 %v1666_v11  ;;  %989 = vmatpush.bf16.msrb.mxu2 %v1670_v13 }
 0x14a   :  { %v521_v1 = vpop.f32.mrf.mxu3  ;;  %v547_v2 = vpop.f32.mrf.mxu2 }
 0x14b   :  { %v2003_v3 = vpop.eup %2002  ;;  %v1721_v2 = vld [vmem:[%s2820_s5 + $0xa0] sm:$0xf] }
 0x14c   :  { %v2005_v4 = vpop.eup %2004  ;;  %v551_v5 = vpack.c.bf16 %v2003_v3, %v2003_v3  ;;  %v1959_v3 = vld [vmem:[%s2820_s5 + $0xa4] sm:$0xf0] }
 0x14d   :  { %v552_v6 = vpack.c.bf16 %v2005_v4, %v2005_v4  ;;  %v1958_v4 = vld [vmem:[%s2820_s5 + $0xa4] sm:$0xf]  ;;  %964 = vmatpush.bf16.msrb.mxu1 %v1658_v23  ;;  %990 = vmatpush.bf16.msrb.mxu2 %v1662_v25  ;;  %v1835_v23 = vld [vmem:[#allocation5 + $0xd0] sm:$0xf]  ;;  %v1768_v25 = vor.u32 %v1968_v20, %v1765_v22  ;;  %v1797_v20 = vld [vmem:[#allocation5 + $0x88] sm:$0xf0] }
 0x14e   :  { %662 = vmatmul.bf16.vlgmr.msra.gmra.mxu3 %v551_v5  ;;  %v1722_v5 = vor.u32 %v1959_v3, %v1721_v2  ;;  %v1845_v2 = vld [vmem:[#allocation5 + $0xe8] sm:$0xf0]  ;;  %v1836_v26 = vor.u32 %v1987_v24, %v1835_v23  ;;  %v833_v23 = vperm.slane %v2592_v38, 3 }
 0x14f   :  { %1574 = vmatmul.msk.bf16.vlgmr.msra.gmra.mxu1 %vm646_vm2, %v552_v6  ;;  %v1723_v6 = vld [vmem:[%s2820_s5 + $0xa8] sm:$0xf0]  ;;  %s2124_s5 = smov [#allocation7]  }
 0x150   :  { %v1726_v7 = vor.u32 %v1958_v4, %v1723_v6  ;;  %977 = vmatpush.bf16.msrb.mxu3 %v1722_v5  ;;  %v699_v6 = vperm.slane %v2603_v44, 2  ;;  %s1257_s22 = sshll.u32 %s2124_s5, 4  ;;  %s1258_s22 = int_to_ptr.vmem [resolvable:$true] %s1257_s22 }
 0x151   :  { %965 = vmatpush.bf16.msrb.mxu1 %v1650_v35  ;;  %991 = vmatpush.bf16.msrb.mxu2 %v1654_v37  ;;  %v1760_v35 = vor.u32 %v1966_v32, %v1757_v33  ;;  %v1985_v37 = vld [vmem:[#allocation5 + $0xc4] sm:$0xf0] }
 0x152   :  { %1003 = vmatpush.bf16.msrb.mxu0 %v1726_v7  ;;  %v1828_v40 = vor.u32 %v1985_v37, %v1827_v36 }
 0x154   :  { %978 = vmatpush.bf16.msrb.mxu3 %v1714_v17 }
 0x155   :  { %966 = vmatpush.bf16.msrb.mxu1 %v1642_v42  ;;  %992 = vmatpush.bf16.msrb.mxu2 %v1646_v45  ;;  %v1832_v42 = vor.u32 %v1984_v39, %v1829_v41  ;;  %v1965_v45 = vld [vmem:[#allocation5 + $0x24] sm:$0xf0] }
 0x156   :  { %1004 = vmatpush.bf16.msrb.mxu0 %v1718_v19  ;;  %v1969_v19 = vld [vmem:[#allocation5 + $0x44] sm:$0xf0]  ;;  %v1748_v47 = vor.u32 %v1965_v45, %v1747_v43 }
 0x157   :  { %v1764_v21 = vor.u32 %v1969_v19, %v1763_v18  ;;  %v1976_v18 = vld [vmem:[#allocation5 + $0x84] sm:$0xf] }
 0x158   :  { %979 = vmatpush.bf16.msrb.mxu3 %v1706_v29  ;;  %v1755_v29 = vld [vmem:[#allocation5 + $0x30] sm:$0xf] }
 0x15a   :  { %1005 = vmatpush.bf16.msrb.mxu0 %v1710_v31  ;;  %v1967_v31 = vld [vmem:[#allocation5 + $0x34] sm:$0xf0] }
 0x15b   :  { %v1756_v34 = vor.u32 %v1967_v31, %v1755_v29  ;;  %v834_v29 = vperm.slane %v2603_v44, 3 }
 0x15c   :  { %1198 = vmatpush.bf16.msra.mxu3 %v1788_v49  ;;  %v1752_v49 = vor.u32 %v1964_v46, %v1749_v48 }
 0x160   :  { %1199 = vmatpush.bf16.msra.mxu3 %v1780_v56  ;;  %v1739_v56 = vld [vmem:[#allocation5 + $0x10] sm:$0xf] }
 0x1cc   :  { %v676_v58 = vpop.f32.mrf.mxu1 }
 0x1d1   :  { %v663_v60 = vpop.f32.mrf.mxu3 }
 0x1d2   :  { %v664_v61 = vadd.f32 %v663_v60, %v576_v59  ;;  %v1784_v59 = vor.u32 %v1972_v54, %v1781_v55  ;;  %v1843_v60 = vld [vmem:[#allocation5 + $0xe0] sm:$0xf]  ;;  %v1821_v54 = vld [vmem:[#allocation5 + $0xb8] sm:$0xf0] }
 0x1d3   :  { %v1824_v55 = vor.u32 %v1982_v52, %v1821_v54 }
 0x1d4   :  { %v677_v62 = vadd.f32 %v676_v58, %v664_v61  ;;  %v678_v63 = vpop.f32.mrf.mxu1  ;;  %v1971_v58 = vld [vmem:[#allocation5 + $0x54] sm:$0xf0]  ;;  %v1989_v61 = vld [vmem:[#allocation5 + $0xe4] sm:$0xf0] }
 0x1d5   :  { %v1970_v63 = vld [vmem:[#allocation5 + $0x54] sm:$0xf]  ;;  %v1772_v4 = vor.u32 %v1971_v58, %v1771_v57  ;;  %v1963_v57 = vld [vmem:[#allocation5 + $0x14] sm:$0xf0] }
 0x1d6   :  { %v681_v0 = vpack.c.bf16 %v677_v62, %v677_v62  ;;  %680 = vst [vmem:[#allocation7] sm:$0xff] %v677_v62  ;;  %v1988_v62 = vld [vmem:[#allocation5 + $0xe4] sm:$0xf]  ;;  %v1962_v58 = vld [vmem:[#allocation5 + $0x14] sm:$0xf] }
 0x1d7   :  { %v1848_v3 = vor.u32 %v1988_v62, %v1845_v2  ;;  %1200 = vmatpush.bf16.msra.mxu3 %v1772_v4  ;;  %v1811_v62 = vld [vmem:[#allocation5 + $0xa0] sm:$0xf]  ;;  %v1813_v2 = vld [vmem:[#allocation5 + $0xa8] sm:$0xf0]  ;;  %1262 = dma.vmem_to_hbm [thread:$0]  %s1258_s22, 128, %s1260_s23, [#allocation4]  }
 0x1d8   :  { %788 = vmatmul.bf16.vlgmr.msra.gmra.mxu2 %v681_v0  ;;  %801 = vmatmul.bf16.vlgmr.msra.gmra.mxu0 %v681_v0  ;;  %v1773_v0 = vld [vmem:[#allocation5 + $0x58] sm:$0xf0]  ;;  %v1731_v4 = vld [vmem:[#allocation5] sm:$0xf] }
 0x1d9   :  { %v665_v1 = vpop.f32.mrf.mxu3  ;;  %1224 = vmatpush.bf16.msra.mxu0 %v1792_v53  ;;  %v1776_v5 = vor.u32 %v1970_v63, %v1773_v0  ;;  %1238 = vmatpush.bf16.msra.mxu2 %v1848_v3  ;;  %v1820_v53 = vor.u32 %v1983_v51, %v1819_v50  ;;  %v1981_v63 = vld [vmem:[#allocation5 + $0xa4] sm:$0xf0]  ;;  %v1980_v0 = vld [vmem:[#allocation5 + $0xa4] sm:$0xf] }
 0x1da   :  { %v1844_v1 = vor.u32 %v1989_v61, %v1843_v60  ;;  %v1741_v60 = vld [vmem:[#allocation5 + $0x18] sm:$0xf0]  ;;  %v1816_v3 = vor.u32 %v1980_v0, %v1813_v2 }
 0x1db   :  { %1201 = vmatpush.bf16.msra.mxu3 %v1764_v21  ;;  %v1744_v61 = vor.u32 %v1962_v58, %v1741_v60  ;;  %v1800_v21 = vor.u32 %v1976_v18, %v1797_v20 }
 0x1dc   :  { %1212 = vmatpush.bf16.msra.mxu1 %v1844_v1  ;;  %v1812_v1 = vor.u32 %v1981_v63, %v1811_v62 }
 0x1dd   :  { %1225 = vmatpush.bf16.msra.mxu0 %v1784_v59  ;;  %1239 = vmatpush.bf16.msra.mxu2 %v1840_v30  ;;  %v1740_v59 = vor.u32 %v1963_v57, %v1739_v56 }
 0x1df   :  { %1202 = vmatpush.bf16.msra.mxu3 %v1756_v34 }
 0x1e0   :  { %1213 = vmatpush.bf16.msra.mxu1 %v1836_v26 }
 0x1e1   :  { %1226 = vmatpush.bf16.msra.mxu0 %v1776_v5  ;;  %1240 = vmatpush.bf16.msra.mxu2 %v1832_v42  ;;  %v1961_v5 = vld [vmem:[#allocation5 + $0x4] sm:$0xf0] }
 0x1e3   :  { %1203 = vmatpush.bf16.msra.mxu3 %v1748_v47 }
 0x1e4   :  { %1214 = vmatpush.bf16.msra.mxu1 %v1828_v40 }
 0x1e5   :  { %1227 = vmatpush.bf16.msra.mxu0 %v1768_v25  ;;  %1241 = vmatpush.bf16.msra.mxu2 %v1824_v55 }
 0x1e7   :  { %1204 = vmatpush.bf16.msra.mxu3 %v1740_v59 }
 0x1e8   :  { %1215 = vmatpush.bf16.msra.mxu1 %v1820_v53 }
 0x1e9   :  { %1228 = vmatpush.bf16.msra.mxu0 %v1760_v35  ;;  %1242 = vmatpush.bf16.msra.mxu2 %v1816_v3 }
 0x1ec   :  { %1216 = vmatpush.bf16.msra.mxu1 %v1812_v1 }
 0x1ed   :  { %1229 = vmatpush.bf16.msra.mxu0 %v1752_v49 }
 0x1f1   :  { %1230 = vmatpush.bf16.msra.mxu0 %v1744_v61 }
 0x255   :  { %v802_v7 = vpop.f32.mrf.mxu0 }
 0x256   :  { %v803_v8 = vadd.f32 %v802_v7, %v699_v6  ;;  %v1960_v6 = vld [vmem:[#allocation5 + $0x4] sm:$0xf]  ;;  %v1732_v7 = vor.u32 %v1961_v5, %v1731_v4 }
 0x258   :  { %2006 = vtanh.f32 %v803_v8  ;;  %v1733_v8 = vld [vmem:[#allocation5 + $0x8] sm:$0xf0]  ;;  %1205 = vmatpush.bf16.msra.mxu3 %v1732_v7 }
 0x25b   :  { %v789_v10 = vpop.f32.mrf.mxu2 }
 0x25c   :  { %v790_v11 = vadd.f32 %v789_v10, %v698_v9  ;;  %v1736_v9 = vor.u32 %v1960_v6, %v1733_v8  ;;  %v1803_v10 = vld [vmem:[#allocation5 + $0x90] sm:$0xf] }
 0x25d   :  { %v804_v12 = vpop.f32.mrf.mxu0 }
 0x25e   :  { %v2007_v13 = vpop.eup %2006  ;;  %2008 = vtanh.f32 %v790_v11  ;;  %v1979_v11 = vld [vmem:[#allocation5 + $0x94] sm:$0xf0]  ;;  %v1978_v12 = vld [vmem:[#allocation5 + $0x94] sm:$0xf]  ;;  %1231 = vmatpush.bf16.msra.mxu0 %v1736_v9 }
 0x25f   :  { %v809_v14 = vpack.c.bf16 %v2007_v13, %v2007_v13  ;;  %v1804_v13 = vor.u32 %v1979_v11, %v1803_v10 }
 0x261   :  { %1727 = vmatmul.msk.bf16.vlgmr.msrb.gmra.mxu3 %vm646_vm2, %v809_v14  ;;  %1728 = vmatmul.msk.bf16.vlgmr.msrb.gmra.mxu0 %vm646_vm2, %v809_v14  ;;  %v1805_v14 = vld [vmem:[#allocation5 + $0x98] sm:$0xf0] }
 0x262   :  { %1217 = vmatpush.bf16.msra.mxu1 %v1804_v13 }
 0x263   :  { %v791_v15 = vpop.f32.mrf.mxu2 }
 0x264   :  { %v2009_v16 = vpop.eup %2008  ;;  %v1808_v15 = vor.u32 %v1978_v12, %v1805_v14 }
 0x265   :  { %v808_v17 = vpack.c.bf16 %v2009_v16, %v2009_v16  ;;  %v1795_v16 = vld [vmem:[#allocation5 + $0x80] sm:$0xf] }
 0x266   :  { %1243 = vmatpush.bf16.msra.mxu2 %v1808_v15 }
 0x267   :  { %967 = vmatmul.bf16.vlgmr.msrb.gmra.mxu1 %v808_v17  ;;  %993 = vmatmul.bf16.vlgmr.msrb.gmra.mxu2 %v808_v17  ;;  %v1977_v17 = vld [vmem:[#allocation5 + $0x84] sm:$0xf0] }
 0x268   :  { %v1796_v19 = vor.u32 %v1977_v17, %v1795_v16 }
 0x26a   :  { %1218 = vmatpush.bf16.msra.mxu1 %v1796_v19  ;;  %1244 = vmatpush.bf16.msra.mxu2 %v1800_v21 }
 0x2de   :  { %v1007_v22 = vpop.f32.mrf.mxu0 }
 0x2e4   :  { %v968_v24 = vpop.f32.mrf.mxu1  ;;  %v981_v25 = vpop.f32.mrf.mxu3 }
 0x2e5   :  { %v969_v26 = vadd.f32 %v968_v24, %v833_v23 }
 0x2e6   :  { %v1009_v27 = vpop.f32.mrf.mxu0 }
 0x2e7   :  { %v982_v28 = vadd.f32 %v981_v25, %v969_v26 }
 0x2e9   :  { %2010 = vtanh.f32 %v982_v28 }
 0x2ea   :  { %v994_v30 = vpop.f32.mrf.mxu2 }
 0x2eb   :  { %v995_v31 = vadd.f32 %v994_v30, %v834_v29 }
 0x2ec   :  { %v970_v32 = vpop.f32.mrf.mxu1  ;;  %v983_v33 = vpop.f32.mrf.mxu3 }
 0x2ed   :  { %v1008_v34 = vadd.f32 %v1007_v22, %v995_v31 }
 0x2ef   :  { %v2011_v35 = vpop.eup %2010  ;;  %2012 = vtanh.f32 %v1008_v34 }
 0x2f0   :  { %v1013_v36 = vpack.c.bf16 %v2011_v35, %v2011_v35 }
 0x2f2   :  { %v996_v37 = vpop.f32.mrf.mxu2  ;;  %1206 = vmatmul.bf16.vlgmr.msra.gmra.mxu3 %v1013_v36  ;;  %1232 = vmatmul.bf16.vlgmr.msra.gmra.mxu0 %v1013_v36 }
 0x2f5   :  { %v2013_v38 = vpop.eup %2012 }
 0x2f6   :  { %v1014_v39 = vpack.c.bf16 %v2013_v38, %v2013_v38 }
 0x2f8   :  { %1849 = vmatmul.msk.bf16.vlgmr.msra.gmra.mxu1 %vm252_vm0, %v1014_v39  ;;  %1850 = vmatmul.msk.bf16.vlgmr.msra.gmra.mxu2 %vm252_vm0, %v1014_v39 }
 0x36f   :  { %v1233_v44 = vpop.f32.mrf.mxu0 }
 0x375   :  { %v1207_v40 = vpop.f32.mrf.mxu3  ;;  %v1220_v41 = vpop.f32.mrf.mxu1 }
 0x376   :  { %v1221_v42 = vadd.f32 %v1220_v41, %v1207_v40 }
 0x377   :  { %v1235_v43 = vpop.f32.mrf.mxu0 }
 0x378   :  { %1250 = vst [vmem:[#allocation8] sm:$0xff] %v1221_v42 }
 0x37b   :  { %v1246_v45 = vpop.f32.mrf.mxu2 }
 0x37c   :  { %v1247_v46 = vadd.f32 %v1246_v45, %v1233_v44 }
 0x37d   :  { %v1209_v47 = vpop.f32.mrf.mxu3  ;;  %v1222_v48 = vpop.f32.mrf.mxu1 }
 0x37e   :  { %1251 = vst.msk [vmem:[#allocation8 + $0x8] sm:$0xff] %vm252_vm0, %v1247_v46 }
 0x37f   :  { %1273 = dma.vmem_to_hbm [thread:$0]  %s1269_s0, 256, %s1271_s25, [#allocation9]  }
 0x383   :  { %v1248_v49 = vpop.f32.mrf.mxu2 }
 0x384   :  { %2114 = dma.done.wait [#allocation4], 128  }
 0x385   :  { %2115 = vsyncadd [#allocation4], 4294967168 }
 0x386   :  { %2116 = dma.done.wait [#allocation9], 256  }
 0x387   :  { %2117 = vsyncadd [#allocation9], 4294967040 }
 0x388   :  { %1282 = vsyncpa [#allocation3], 1 }
 0x389   :  { %1283 = vsyncpa [#allocation6], 1 }
 0x38a   :  { %1284 = vsyncpa [#allocation4], 1 }
 0x38b   :  { %1285 = vsyncpa [#allocation9], 1 }

</bundles_post_ra>
